<compile_context>
chip_gen: v5e
topology: v5e:2x2
jax: 0.10.0
libtpu: 0.0.40
codegen_flags: <defaults>
</compile_context>

<pallas_src>
import functools

import jax
import jax.numpy as jnp
from jax.experimental import pallas as pl
from jax.experimental.pallas import tpu as pltpu


def _round_up(n, m):
    return ((n + m - 1) // m) * m


def _layer_norm(x, a2, b2, eps):
    # Annotated-Transformer LayerNorm: unbiased std, eps added to std.
    # NOTE: (d - 1) is degenerate for d == 1 (not a realistic hidden size).
    d = x.shape[-1]
    mean = jnp.mean(x, axis=-1, keepdims=True)
    diff = x - mean
    var_unbiased = jnp.sum(diff * diff, axis=-1, keepdims=True) / (d - 1)
    std = jnp.sqrt(var_unbiased)
    # EUP approximate reciprocal (separate VLIW slot) instead of a VALU divide.
    # Adds ~1e-3-level relative error; acceptable for inference.
    inv = pl.reciprocal(std + eps, approx=True)
    return (a2 * diff) * inv + b2


def _kernel_resident_weight(x_ref, a2_ref, b2_ref, w_ref, bias_ref, o_ref, *, eps):
    """1-D row grid; whole (D, D) weight stays in VMEM (small / medium D)."""
    x = x_ref[...].astype(jnp.float32)
    normed = _layer_norm(x, a2_ref[...], b2_ref[...], eps)
    # sublayer = Linear(D, D): bf16 inputs, f32 accumulation on the MXU.
    sub = jnp.dot(normed.astype(w_ref.dtype), w_ref[...],
                  preferred_element_type=jnp.float32)
    # dropout(eval) is identity; residual add stays exact f32.
    o_ref[...] = (x + sub + bias_ref[...]).astype(o_ref.dtype)


def _kernel_col_tiled(x_full_ref, x_col_ref, a2_ref, b2_ref, w_ref, bias_ref,
                      o_ref, normed_ref, *, eps):
    """2-D grid (row tiles, weight-column tiles) for large D / v7x VMEM.

    LayerNorm is computed once per row tile (j == 0) into a VMEM scratch
    (bf16) and reused for every weight column slab, so the (D, D) weight is
    streamed in (D, tn) pieces and never fully resident.
    """
    j = pl.program_id(1)

    @pl.when(j == 0)
    def _():
        x = x_full_ref[...].astype(jnp.float32)
        normed_ref[...] = _layer_norm(
            x, a2_ref[...], b2_ref[...], eps).astype(normed_ref.dtype)

    sub = jnp.dot(normed_ref[...], w_ref[...], preferred_element_type=jnp.float32)
    o_ref[...] = (x_col_ref[...].astype(jnp.float32) + sub
                  + bias_ref[...]).astype(o_ref.dtype)


@functools.lru_cache(maxsize=1)
def _pick_hw_defaults():
    """(vmem_limit_bytes, row_tile) per generation.

    v5e/v6e have 128 MiB physical VMEM -> big row tiles + ~100 MiB limit
    (measured pipelined-copy efficiency ~63% -> ~85% of HBM roofline going
    256 -> 512 rows).  v7x has 64 MiB per TC -> stay at 256 rows / 48 MiB.
    """
    vmem_cap = 64 * 1024 * 1024
    try:
        vmem_cap = int(pltpu.get_tpu_info().vmem_capacity_bytes)
    except Exception:
        pass
    if vmem_cap >= 128 * 1024 * 1024:
        return 100 * 1024 * 1024, 512
    return 48 * 1024 * 1024, 256


def sublayer_connection(x, a2, b2, w, bias, *, eps=1e-6, row_tile=None,
                        col_tile=512, vmem_limit_bytes=None):
    """x: (B, S, D). Returns x + Linear(LayerNorm(x)) (dropout = eval mode).

    `w` must already be in the matmul dtype (e.g. bf16, converted ONCE at model
    init) so no per-call cast / extra HBM pass happens on the hot path.
    `col_tile` should be a multiple of 256 on v6e/v7x (2x256^2 MXU) and of 128
    on v5e; the default 512 satisfies both.
    """
    B, S, D = x.shape
    n_rows = B * S

    default_vmem, default_row_tile = _pick_hw_defaults()
    if vmem_limit_bytes is None:
        vmem_limit_bytes = default_vmem
    if row_tile is None:
        row_tile = default_row_tile
    col_tile = _round_up(col_tile, 128)

    # Row tile: must be a multiple of 8 or equal n_rows (full dim). No wrapper
    # pad/slice passes — Pallas masks the ragged last block.
    tile = row_tile if n_rows > row_tile else n_rows
    if tile == n_rows and n_rows >= 16:
        # Guarantee >= 2 row-grid iterations so both v7x TensorCores get work.
        tile = _round_up(-(-n_rows // 2), 8)
    num_row_tiles = -(-n_rows // tile)

    x2 = x.reshape(n_rows, D)            # layout no-op
    a2r = a2.reshape(1, D)
    b2r = b2.reshape(1, D)
    biasr = bias.reshape(1, D)

    kernel_params = pltpu.CompilerParams(
        dimension_semantics=("parallel",),
        vmem_limit_bytes=vmem_limit_bytes,
    )

    # Column-tile the weight only when D is lane-aligned and too big for a
    # comfortably resident (D, D) block.
    use_col_tiling = (D % 128 == 0) and (D > col_tile)

    if not use_col_tiling:
        # TODO(synk): very large D that is not a multiple of 128 keeps the full
        # weight resident here; pad D at the model level instead.
        out = pl.pallas_call(
            functools.partial(_kernel_resident_weight, eps=eps),
            out_shape=jax.ShapeDtypeStruct((n_rows, D), x.dtype),
            grid_spec=pltpu.PrefetchScalarGridSpec(
                num_scalar_prefetch=0,
                grid=(num_row_tiles,),
                in_specs=[
                    pl.BlockSpec((tile, D), lambda i: (i, 0)),   # x rows
                    pl.BlockSpec((1, D), lambda i: (0, 0)),      # a_2
                    pl.BlockSpec((1, D), lambda i: (0, 0)),      # b_2
                    pl.BlockSpec((D, D), lambda i: (0, 0)),      # weight (bf16)
                    pl.BlockSpec((1, D), lambda i: (0, 0)),      # bias
                ],
                out_specs=pl.BlockSpec((tile, D), lambda i: (i, 0)),
            ),
            compiler_params=kernel_params,
        )(x2, a2r, b2r, w, biasr)
    else:
        tn = col_tile
        num_col_tiles = -(-D // tn)
        out = pl.pallas_call(
            functools.partial(_kernel_col_tiled, eps=eps),
            out_shape=jax.ShapeDtypeStruct((n_rows, D), x.dtype),
            grid_spec=pltpu.PrefetchScalarGridSpec(
                num_scalar_prefetch=0,
                grid=(num_row_tiles, num_col_tiles),
                in_specs=[
                    pl.BlockSpec((tile, D), lambda i, j: (i, 0)),   # x (full row, LN)
                    pl.BlockSpec((tile, tn), lambda i, j: (i, j)),  # x (residual slab)
                    pl.BlockSpec((1, D), lambda i, j: (0, 0)),      # a_2
                    pl.BlockSpec((1, D), lambda i, j: (0, 0)),      # b_2
                    pl.BlockSpec((D, tn), lambda i, j: (0, j)),     # weight column slab
                    pl.BlockSpec((1, tn), lambda i, j: (0, j)),     # bias slab
                ],
                out_specs=pl.BlockSpec((tile, tn), lambda i, j: (i, j)),
                scratch_shapes=[pltpu.VMEM((tile, D), w.dtype)],    # normed rows
            ),
            compiler_params=pltpu.CompilerParams(
                dimension_semantics=("parallel", "arbitrary"),
                vmem_limit_bytes=vmem_limit_bytes,
            ),
        )(x2, x2, a2r, b2r, w, biasr)

    return out.reshape(B, S, D)


def _reference(x, a2, b2, w, bias, eps=1e-6):
    mean = jnp.mean(x, axis=-1, keepdims=True)
    diff = x - mean
    var = jnp.sum(diff * diff, axis=-1, keepdims=True) / (x.shape[-1] - 1)
    std = jnp.sqrt(var)
    normed = a2 * diff / (std + eps) + b2
    return x + (normed @ w + bias)


if __name__ == "__main__":
    def run_case(B, S, D, *, col_tile, tol):
        key = jax.random.PRNGKey(0)
        kx, kw, kb = jax.random.split(key, 3)

        x = jax.random.normal(kx, (B, S, D), dtype=jnp.float32)
        a2 = jnp.ones((D,), dtype=jnp.float32)       # LayerNorm a_2 init
        b2 = jnp.zeros((D,), dtype=jnp.float32)      # LayerNorm b_2 init
        w_f32 = jax.random.normal(kw, (D, D), dtype=jnp.float32) / jnp.sqrt(D)
        bias = jax.random.normal(kb, (D,), dtype=jnp.float32) * 0.01

        # One-time init conversion (outside the per-call hot path): bf16 weight.
        w_bf16 = jax.block_until_ready(w_f32.astype(jnp.bfloat16))

        out = sublayer_connection(x, a2, b2, w_bf16, bias, col_tile=col_tile)
        out = jax.block_until_ready(out)

        ref = _reference(x, a2, b2, w_f32, bias)
        assert out.shape == (B, S, D)
        err = float(jnp.max(jnp.abs(out - ref)))
        # bf16 matmul inputs + approx reciprocal => ~1e-2-level error confined
        # to the linear path; residual (x) path is exact f32.
        assert jnp.allclose(out, ref, atol=tol, rtol=tol), f"max abs err = {err}"

    # Demo shape from the module (batch=2, seq=8, hidden=32): resident-weight path.
    run_case(2, 8, 32, col_tile=512, tol=3e-2)
    # Exercise the weight-column-tiled (large-D / v7x) path at small shapes by
    # forcing a 128-wide column tile on D=256.
    run_case(2, 8, 256, col_tile=128, tol=5e-2)

    print("KERNEL_OK")
</pallas_src>

<mosaic_0001>
module attributes {stable_mosaic.version = 11 : i64} {
  func.func @_kernel_resident_weight(%arg0: i32, %arg1: memref<8x32xf32, #tpu.memory_space<vmem>>, %arg2: memref<1x32xf32, #tpu.memory_space<vmem>>, %arg3: memref<1x32xf32, #tpu.memory_space<vmem>>, %arg4: memref<32x32xbf16, #tpu.memory_space<vmem>>, %arg5: memref<1x32xf32, #tpu.memory_space<vmem>>, %arg6: memref<8x32xf32, #tpu.memory_space<vmem>>) attributes {dimension_semantics = [#tpu.dimension_semantics<parallel>], iteration_bounds = array<i64: 2>, scalar_prefetch = 0 : i64, scratch_operands = 0 : i64, tpu.core_type = #tpu.core_type<tc>, window_params = [{transform_indices = @transform_0, window_bounds = array<i64: 8, 32>}, {pipeline_mode = #tpu.pipeline_mode<synchronous>, transform_indices = @transform_1, window_bounds = array<i64: 1, 32>}, {pipeline_mode = #tpu.pipeline_mode<synchronous>, transform_indices = @transform_2, window_bounds = array<i64: 1, 32>}, {pipeline_mode = #tpu.pipeline_mode<synchronous>, transform_indices = @transform_3, window_bounds = array<i64: 32, 32>}, {pipeline_mode = #tpu.pipeline_mode<synchronous>, transform_indices = @transform_4, window_bounds = array<i64: 1, 32>}, {transform_indices = @transform_5, window_bounds = array<i64: 8, 32>}]} {
    %c0 = arith.constant 0 : index
    %c0_0 = arith.constant 0 : index
    %0 = vector.load %arg1[%c0, %c0_0] : memref<8x32xf32, #tpu.memory_space<vmem>>, vector<8x32xf32>
    %c0_1 = arith.constant 0 : index
    %c0_2 = arith.constant 0 : index
    %1 = vector.load %arg2[%c0_1, %c0_2] : memref<1x32xf32, #tpu.memory_space<vmem>>, vector<1x32xf32>
    %c0_3 = arith.constant 0 : index
    %c0_4 = arith.constant 0 : index
    %2 = vector.load %arg3[%c0_3, %c0_4] : memref<1x32xf32, #tpu.memory_space<vmem>>, vector<1x32xf32>
    %cst = arith.constant dense<0.000000e+00> : vector<8xf32>
    %3 = vector.multi_reduction <add>, %0, %cst [1] : vector<8x32xf32> to vector<8xf32>
    %4 = vector.shape_cast %3 : vector<8xf32> to vector<8x1xf32>
    %cst_5 = arith.constant 3.200000e+01 : f32
    %5 = vector.broadcast %cst_5 : f32 to vector<8x1xf32>
    %6 = arith.divf %4, %5 : vector<8x1xf32>
    %7 = vector.broadcast %6 : vector<8x1xf32> to vector<8x32xf32>
    %8 = arith.subf %0, %7 : vector<8x32xf32>
    %9 = arith.mulf %8, %8 : vector<8x32xf32>
    %cst_6 = arith.constant dense<0.000000e+00> : vector<8xf32>
    %10 = vector.multi_reduction <add>, %9, %cst_6 [1] : vector<8x32xf32> to vector<8xf32>
    %11 = vector.shape_cast %10 : vector<8xf32> to vector<8x1xf32>
    %cst_7 = arith.constant 3.100000e+01 : f32
    %12 = vector.broadcast %cst_7 : f32 to vector<8x1xf32>
    %13 = arith.divf %11, %12 : vector<8x1xf32>
    %14 = math.sqrt %13 : vector<8x1xf32>
    %cst_8 = arith.constant 9.99999997E-7 : f32
    %15 = vector.broadcast %cst_8 : f32 to vector<8x1xf32>
    %16 = arith.addf %14, %15 : vector<8x1xf32>
    %17 = tpu.reciprocal %16 {approx = true} : vector<8x1xf32> -> vector<8x1xf32>
    %18 = vector.broadcast %1 : vector<1x32xf32> to vector<8x32xf32>
    %19 = arith.mulf %18, %8 : vector<8x32xf32>
    %20 = vector.broadcast %17 : vector<8x1xf32> to vector<8x32xf32>
    %21 = arith.mulf %19, %20 : vector<8x32xf32>
    %22 = vector.broadcast %2 : vector<1x32xf32> to vector<8x32xf32>
    %23 = arith.addf %21, %22 : vector<8x32xf32>
    %24 = arith.truncf %23 : vector<8x32xf32> to vector<8x32xbf16>
    %c0_9 = arith.constant 0 : index
    %c0_10 = arith.constant 0 : index
    %25 = vector.load %arg4[%c0_9, %c0_10] : memref<32x32xbf16, #tpu.memory_space<vmem>>, vector<32x32xbf16>
    %cst_11 = arith.constant dense<0.000000e+00> : vector<8x32xf32>
    %26 = tpu.matmul %24, %25, %cst_11 {dimension_numbers = #tpu.dot_dimension_numbers<[1], [0], [0], [1], [0, 0, 1, 1], [], []>} : vector<8x32xbf16>, vector<32x32xbf16>, vector<8x32xf32> -> vector<8x32xf32>
    %27 = arith.addf %0, %26 : vector<8x32xf32>
    %c0_12 = arith.constant 0 : index
    %c0_13 = arith.constant 0 : index
    %28 = vector.load %arg5[%c0_12, %c0_13] : memref<1x32xf32, #tpu.memory_space<vmem>>, vector<1x32xf32>
    %29 = vector.broadcast %28 : vector<1x32xf32> to vector<8x32xf32>
    %30 = arith.addf %27, %29 : vector<8x32xf32>
    %c0_14 = arith.constant 0 : index
    %c0_15 = arith.constant 0 : index
    %31 = vector.load %arg6[%c0_14, %c0_15] : memref<8x32xf32, #tpu.memory_space<vmem>>, vector<8x32xf32>
    tpu.vector_store %arg6[%c0_14, %c0_15], %30 {strides = array<i32>} : memref<8x32xf32, #tpu.memory_space<vmem>>, vector<8x32xf32>,
    return
  }
  func.func @transform_0(%arg0: i32) -> (i32, i32) {
    %c0_i32 = arith.constant 0 : i32
    %c0_i32_0 = arith.constant 0 : i32
    return %arg0, %c0_i32 : i32, i32
  }
  func.func @transform_1(%arg0: i32) -> (i32, i32) {
    %c0_i32 = arith.constant 0 : i32
    %c0_i32_0 = arith.constant 0 : i32
    %c0_i32_1 = arith.constant 0 : i32
    return %c0_i32, %c0_i32_0 : i32, i32
  }
  func.func @transform_2(%arg0: i32) -> (i32, i32) {
    %c0_i32 = arith.constant 0 : i32
    %c0_i32_0 = arith.constant 0 : i32
    %c0_i32_1 = arith.constant 0 : i32
    return %c0_i32, %c0_i32_0 : i32, i32
  }
  func.func @transform_3(%arg0: i32) -> (i32, i32) {
    %c0_i32 = arith.constant 0 : i32
    %c0_i32_0 = arith.constant 0 : i32
    %c0_i32_1 = arith.constant 0 : i32
    return %c0_i32, %c0_i32_0 : i32, i32
  }
  func.func @transform_4(%arg0: i32) -> (i32, i32) {
    %c0_i32 = arith.constant 0 : i32
    %c0_i32_0 = arith.constant 0 : i32
    %c0_i32_1 = arith.constant 0 : i32
    return %c0_i32, %c0_i32_0 : i32, i32
  }
  func.func @transform_5(%arg0: i32) -> (i32, i32) {
    %c0_i32 = arith.constant 0 : i32
    %c0_i32_0 = arith.constant 0 : i32
    return %arg0, %c0_i32 : i32, i32
  }
}

</mosaic_0001>

<bundles_post_ra>
// kernel: tpu_custom_call.1
= control target key start
LH: loop header
LB: loop body
LE: loop exit
PB: predicated region body
PF: predicated region fallthrough
CT: control target
= control target key end

     0   :  { %10 = vsyncpa [#allocation3], 0  ;;  %s937_s0 = inlined_call_operand.hbm [shape: f32[16,32], index: 0, kind: input, shape index: {}]   ;;  %s938_s1 = inlined_call_operand.hbm [shape: f32[1,32], index: 1, kind: input, shape index: {}]   ;;  %s939_s2 = inlined_call_operand.vmem [shape: f32[1,32], index: 2, kind: input, shape index: {}]   ;;  %s940_s3 = inlined_call_operand.hbm [shape: bf16[32,32], index: 3, kind: input, shape index: {}]   ;;  %s941_s4 = inlined_call_operand.vmem [shape: f32[1,32], index: 4, kind: input, shape index: {}]   ;;  %s942_s5 = inlined_call_operand.hbm [shape: f32[16,32], index: 5, kind: output, shape index: {}]  }
   0x1   :  { %12 = vsyncpa [#allocation3 + $0x1], 0 }
   0x2   :  { %13 = vsyncpa [#allocation6], 0 }
   0x3   :  { %14 = vsyncpa [#allocation4], 0 }
   0x4   :  { %16 = vsyncpa [#allocation4 + $0x1], 0  ;;  %s777_s18 = smov 0   ;;  %s779_s19 = smov 0  }
   0x5   :  { %s781_s20 = smov 0   ;;  %s783_s21 = smov 0  }
   0x6 LB: > { %s798_s22 = sadd.s32 4294967295, %s739_s21   ;;  %s470_s23 = sadd.s32 4294967294, %s739_s21   ;;  %s739_s21 = sphi %s783_s21, %s952_s21   ;;  %s735_s20 = sphi %s781_s20, %s951_s20   ;;  %s731_s19 = sphi %s779_s19, %s950_s19   ;;  %s727_s18 = sphi %s777_s18, %s949_s18  }
   0x7   : > { %p42_p0 = scmp.ne.s32.totalorder %s731_s19, %s727_s18  ;;  %p43_p1 = scmp.eq.s32.totalorder %s798_s22, 0 }
   0x8   : > { %p150_p2 = scmp.eq.s32.totalorder %s798_s22, 1  ;;  %p156_p3 = scmp.eq.s32.totalorder %s470_s23, 1 }
   0x9   : > { %p807_p4 = por %p43_p1, %p42_p0  ;;  %p471_p5 = scmp.ge.s32.totalorder %s739_s21, 1 }
   0xa   : > { %p812_p6 = por %p156_p3, %p42_p0  ;;  %p163_p7 = scmp.lt.s32.totalorder %s739_s21, 3 }
   0xb   : > { %s175_s28 = sshll.u32 %s938_s1, 4  ;;  %s741_s30 = smov [#allocation5]   ;;  %s176_s28 = int_to_ptr.hbm [resolvable:$true] %s175_s28 }
   0xc   : > { %p820_p8 = pnand %p471_p5, %p163_p7  ;;  %s177_s6 = sshll.u32 %s741_s30, 4  ;;  %s178_s6 = int_to_ptr.vmem [resolvable:$true] %s177_s6 }
   0xd   : > { %s189_s9 = sshll.u32 %s940_s3, 4  ;;  %s742_s10 = smov [#allocation7]   ;;  %s190_s9 = int_to_ptr.hbm [resolvable:$true] %s189_s9 }
   0xe   : > { %p509_p10 = pneg %p820_p8  ;;  %s191_s11 = sshll.u32 %s742_s10, 4  ;;  %s192_s11 = int_to_ptr.vmem [resolvable:$true] %s191_s11 }
   0xf   : > { %s743_s12 = smov 64   ;;  %s744_s13 = smov 4  }
  0x10   : > { %p510_p11 = pnand %p509_p10, %p43_p1  ;;  %s833_s14 = sadd.s32 1, %s739_s21  }
  0x11   : > { %s26_s15 = ssub.s32 %s739_s21, %s833_s14  ;;  %s29_s16 = sadd.s32 1, %s735_s20 }
  0x12   : > { %512 = dma.hbm_to_vmem [thread:$0]  (!%p510_p11), %s176_s28, 16, %s178_s6, [#allocation6]  }
  0x13   : > { %515 = dma.hbm_to_vmem [thread:$0]  (!%p510_p11), %s190_s9, 256, %s192_s11, [#allocation6], %s743_s12, %s743_s12, %s744_s13  }
  0x14   : > { %p27_p12 = scmp.eq.s32.totalorder %s26_s15, 0  ;;  %p36_p13 = scmp.ne.s32.totalorder %s735_s20, %s731_s19 }
  0x15   : > { %p37_p0 = scmp.eq.s32.totalorder %s739_s21, 0  ;;  %p526_p7 = scmp.lt.s32.totalorder %s739_s21, 2 }
  0x16   : > { %s842_s17 = scalar_select %p27_p12, %s735_s20, %s29_s16  }
  0x17   : > { %p38_p3 = por %p37_p0, %p36_p13  ;;  %p846_p5 = por %p150_p2, %p36_p13 }
  0x18   : > { %s208_s26 = sand.u32 1, %s735_s20   ;;  %s476_s28 = sshll.u32 %s739_s21, 3 }
  0x19   : > { %s475_s27 = sshll.u32 %s208_s26, 3  ;;  %s216_s7 = scalar_lea.hbm %s937_s0, %s476_s28 }
  0x1a   : > { %s212_s8 = scalar_lea.vmem [#allocation2], %s475_s27  ;;  %s218_s10 = sshll.u32 %s216_s7, 4  ;;  %s219_s10 = int_to_ptr.hbm [resolvable:$true] %s218_s10 }
  0x1b   : > { %s220_s9 = sshll.u32 %s212_s8, 4  ;;  %p856_p10 = pnand %p526_p7, %p38_p3  ;;  %s221_s9 = int_to_ptr.vmem [resolvable:$true] %s220_s9 }
  0x1c   : > { %s209_s12 = scalar_lea.sflag [#allocation3], %s208_s26  ;;  %s639_s13 = sshra.s32 %s219_s10, 4  ;;  %s640_s13 = int_to_ptr.hbm [resolvable:$true] %s639_s13 }
  0x1d   : > { %s641_s15 = scalar_lea.hbm %s640_s13, 8  ;;  %p643_p11 = pneg %p856_p10 }
  0x1e   : > { %p642_p2 = scmp.ne.s32.totalorder %s640_s13, %s641_s15  ;;  %s646_s28 = scalar_lea.hbm %s937_s0, 16 }
  0x1f   : > { %p647_p0 = scmp.lt.s32.totalorder %s640_s13, %s937_s0  ;;  %p648_p3 = scmp.lt.s32.totalorder %s646_s28, %s641_s15 }
  0x20   : > { %p644_p12 = pnand %p643_p11, %p642_p2 }
  0x21   : > { %p649_p7 = por %p648_p3, %p647_p0 }
  0x22   : > { %p645_p13 = pneg %p644_p12 }
  0x24   : > { %p650_p9 = pnand %p649_p7, %p645_p13 }
  0x26   : > { %653 = shalt.err (!%p650_p9)
}
  0x27   : > { %519 = dma.hbm_to_vmem [thread:$0]  (!%p856_p10), %s219_s10, 128, %s221_s9, %s209_s12  }
  0x28   : > { %229 = sbr.rel (%p820_p8) target bundleno = 461 (0x1cd), region = 40  ;;  %s873_s26 = sand.u32 (!%p820_p8), 1, %s731_s19  }
  0x29   : > { %s478_s7 = sshll.u32 (!%p820_p8), %s873_s26, 3  ;;  %s232_s8 = scalar_lea.sflag (!%p820_p8), [#allocation3], %s873_s26 }
  0x2a   : > { %s235_s13 = scalar_lea.vmem (!%p820_p8), [#allocation2], %s478_s7 }
  0x2d   : > { %714 = dma.done.wait (%p807_p4), %s232_s8, 128  }
  0x2e   : > { %716 = vsyncadd (%p807_p4), %s232_s8, 4294967168 }
  0x2f   : > { %718 = dma.done.wait (%p43_p1), [#allocation6], 272  }
  0x30   : > { %720 = vsyncadd (%p43_p1), [#allocation6], 4294967024  ;;  %vm277_vm0 = vcmask 261120   ;;  %v887_v0 = vld [vmem:[%s235_s13] sm:$0xff]  ;;  %v745_v2 = vmov 32.0   ;;  %v746_v14 = vmov 31.0  }
  0x31   : > { %v278_v1 = vsel %vm277_vm0, %v887_v0, 0.0  ;;  %571 = vrcp.f32 %v745_v2  ;;  %v496_v15 = vld [vmem:[#allocation7 + $0x8] sm:$0xff]  ;;  %v495_v17 = vld [vmem:[#allocation7] sm:$0xff]  ;;  %v568_v36 = vld [vmem:[#allocation5] ss:$0 sm:$0xff]  ;;  %s492_s9 = sshll.u32 %s798_s22, 3 }
  0x32   : > { %279 = vadd.xlane.f32.xlu0 %v278_v1  ;;  %573 = vrcp.f32 %v746_v14  ;;  %351 = vmatpush.bf16.msra.mxu0 %v496_v15  ;;  %v569_v38 = vld [vmem:[%s939_s2] ss:$0 sm:$0xff]  ;;  %s376_s12 = scalar_lea.hbm %s942_s5, %s492_s9  ;;  %s272_s27 = scalar_lea.vmem [#allocation8], %s478_s7 }
  0x33   : > { %v570_v43 = vld [vmem:[%s941_s4] ss:$0 sm:$0xff]  ;;  %s378_s28 = sshll.u32 %s272_s27, 4  ;;  %s380_s30 = sshll.u32 %s376_s12, 4  ;;  %s379_s28 = int_to_ptr.vmem [resolvable:$true] %s378_s28  ;;  %s381_s30 = int_to_ptr.hbm [resolvable:$true] %s380_s30 }
  0x34   : > { %s366_s22 = scalar_lea.sflag [#allocation4], %s873_s26  ;;  %s683_s6 = sshra.s32 %s381_s30, 4  ;;  %s684_s6 = int_to_ptr.hbm [resolvable:$true] %s683_s6 }
  0x35   : > { %s685_s8 = scalar_lea.hbm %s684_s6, 8  ;;  %s689_s7 = scalar_lea.hbm %s942_s5, 16 }
  0x36   : > { %352 = vmatpush.bf16.msra.mxu0 %v495_v17  ;;  %p686_p1 = scmp.ne.s32.totalorder %s684_s6, %s685_s8  ;;  %p690_p9 = scmp.lt.s32.totalorder %s684_s6, %s942_s5 }
  0x37   : > { %v572_v3 = vpop.eup %571  ;;  %p691_p10 = scmp.lt.s32.totalorder %s689_s7, %s685_s8 }
  0x38   : > { %v282_v4 = vmul.f32 32.0, %v572_v3  ;;  %vm286_vm1 = vweird.f32 %v572_v3  ;;  %v574_v16 = vpop.eup %573  ;;  %p687_p4 = pnand %p686_p1, %p846_p5 }
  0x39   : > { %v295_v18 = vmul.f32 31.0, %v574_v16  ;;  %vm299_vm2 = vweird.f32 %v574_v16  ;;  %p692_p2 = por %p691_p10, %p690_p9 }
  0x3a   : > { %v283_v5 = vsub.f32 1.0, %v282_v4  ;;  %p688_p8 = pneg %p687_p4 }
  0x3b   : > { %v296_v19 = vsub.f32 1.0, %v295_v18 }
  0x3c   : > { %v284_v6 = vmul.f32 %v572_v3, %v283_v5  ;;  %p693_p11 = pnand %p692_p2, %p688_p8 }
  0x3d   : > { %v297_v20 = vmul.f32 %v574_v16, %v296_v19 }
  0x3e   : > { %v285_v7 = vadd.f32 %v572_v3, %v284_v6 }
  0x3f   : > { %v298_v21 = vadd.f32 %v574_v16, %v297_v20 }
  0x40   : > { %v287_v8 = vsel %vm286_vm1, %v572_v3, %v285_v7 }
  0x41   : > { %v300_v22 = vsel %vm299_vm2, %v574_v16, %v298_v21 }
  0xa5   : > { %v280_v9 = vpop.xlane.xlu0 %279 }
  0xa6   : > { %v288_v10 = vmul.f32 %v287_v8, %v280_v9 }
  0xa8   : > { %v289_v11 = vsub.f32 %v887_v0, %v288_v10 }
  0xaa   : > { %v290_v12 = vmul.f32 %v289_v11, %v289_v11  ;;  %v319_v37 = vmul.f32 %v568_v36, %v289_v11 }
  0xac   : > { %v291_v13 = vsel %vm277_vm0, %v290_v12, 0.0 }
  0xad   : > { %292 = vadd.xlane.f32.xlu0 %v291_v13 }
 0x120   : > { %v293_v23 = vpop.xlane.xlu0 %292 }
 0x121   : > { %v301_v24 = vmul.f32 %v300_v22, %v293_v23 }
 0x123   : > { %575 = vrsqrt.f32 %v301_v24  ;;  %vm309_vm3 = vcmp.eq.f32.partialorder %v301_v24, inf  ;;  %v312_v32 = vand.u32 2147483648, %v301_v24  ;;  %vm311_vm4 = vcmp.eq.f32.partialorder %v301_v24, 0.0 }
 0x129   : > { %v576_v25 = vpop.eup %575 }
 0x12a   : > { %v303_v26 = vmul.f32 %v576_v25, %v301_v24 }
 0x12c   : > { %v304_v27 = vmul.f32 %v576_v25, %v303_v26 }
 0x12e   : > { %v305_v28 = vmul.f32 0.5, %v304_v27 }
 0x130   : > { %v306_v29 = vsub.f32 1.5, %v305_v28 }
 0x132   : > { %v307_v30 = vmul.f32 %v576_v25, %v306_v29 }
 0x134   : > { %v308_v31 = vmul.f32 %v307_v30, %v301_v24 }
 0x136   : > { %v310_v33 = vsel %vm309_vm3, %v301_v24, %v308_v31 }
 0x137   : > { %v313_v34 = vsel %vm311_vm4, %v312_v32, %v310_v33 }
 0x138   : > { %v314_v35 = vadd.f32 1e-06, %v313_v34 }
 0x13a   : > { %577 = vrcp.f32 %v314_v35 }
 0x140   : > { %v578_v39 = vpop.eup %577 }
 0x141   : > { %v320_v40 = vmul.f32 %v578_v39, %v319_v37 }
 0x143   : > { %v324_v41 = vadd.f32 %v569_v38, %v320_v40 }
 0x145   : > { %v325_v42 = vpack.c.bf16 %v324_v41, %v324_v41 }
 0x147   : > { %490 = vmatmul.msk.bf16.vlgmr.msra.gmra.mxu0 %vm277_vm0, %v325_v42 }
 0x1c4   : > { %v354_v44 = vpop.f32.mrf.mxu0 }
 0x1c5   : > { %v358_v45 = vadd.f32 %v354_v44, %v887_v0 }
 0x1c7   : > { %v363_v46 = vadd.f32 %v570_v43, %v358_v45 }
 0x1c9   : > { %364 = vst.msk [vmem:[%s272_s27] sm:$0xff] %vm277_vm0, %v363_v46 }
 0x1ca   : > { %696 = shalt.err (!%p693_p11)
}
 0x1cb   : > { %507 = dma.vmem_to_hbm [thread:$0]  (%p846_p5), %s379_s28, 128, %s381_s30, %s366_s22  }
 0x1cc   : > { %v356_v47 = vpop.f32.mrf.mxu0 }
 0x1cd PF: > { %s392_s26 = sand.u32 1, %s727_s18   ;;  %p948_p12 = scmp.ge.s32.totalorder %s739_s21, 2 }
 0x1ce   : > { %s393_s10 = scalar_lea.sflag [#allocation4], %s392_s26 }
 0x1cf   : > { %p521_p13 = pnand %p948_p12, %p812_p6 }
 0x1d1   : > { %p522_p0 = pneg %p521_p13 }
 0x1d3   : > { %722 = dma.done.wait (%p522_p0), %s393_s10, 128  }
 0x1d4   : > { %724 = vsyncadd (%p522_p0), %s393_s10, 4294967168  ;;  %p19_p3 = scmp.ge.s32.totalorder %s833_s14, 4   ;;  %s949_s18 = smov %s731_s19 }
 0x1d5   : > { %s950_s19 = smov %s735_s20  ;;  %s951_s20 = smov %s842_s17 }
 0x1d6   : > { %s952_s21 = smov %s833_s14  ;;  %21 = sbr.rel (!%p19_p3) target bundleno = 6 (0x6), region = 93 }
 0x1db   :  { %399 = vsyncpa [#allocation3], 1 }
 0x1dc   :  { %401 = vsyncpa [#allocation3 + $0x1], 1 }
 0x1dd   :  { %402 = vsyncpa [#allocation6], 1 }
 0x1de   :  { %403 = vsyncpa [#allocation4], 1 }
 0x1df   :  { %405 = vsyncpa [#allocation4 + $0x1], 1 }

</bundles_post_ra>
